<compile_context>
chip_gen: v7x
topology: tpu7x:2x2x1
jax: 0.10.0
libtpu: 0.0.40
codegen_flags: <defaults>
</compile_context>

<pallas_src>
import functools

import jax
import jax.numpy as jnp
from jax.experimental import pallas as pl
from jax.experimental.pallas import tpu as pltpu

_LN_EPS = 1e-5  # torch.nn.LayerNorm default


# --------------------------- VMEM budget (generation-aware) --------------------
def _detect_vmem_capacity_bytes():
    """Physical per-core VMEM (128 MiB v5e/v6e, 64 MiB v7x); conservative fallback."""
    try:
        info = pltpu.get_tpu_info()
        cap = getattr(info, "vmem_capacity_bytes", None)
        if cap:
            return int(cap)
    except Exception:
        pass
    return 64 * 1024 * 1024  # most constrained real part (v7x per-TC)


_VMEM_CAPACITY = _detect_vmem_capacity_bytes()
# Scoped limit handed to Mosaic: leave headroom for compiler-internal scratch.
_VMEM_LIMIT = max(32 * 1024 * 1024, int(_VMEM_CAPACITY * 0.70))
# Budget we size our own (double-buffered) tiles against: below the limit.
_VMEM_BUDGET = int(_VMEM_LIMIT * 0.80)
# LayerNorm is pure mem-bound -> large row tiles (in + out double-buffered fits).
_LN_TILE_BYTES = min(8 * 1024 * 1024, _VMEM_BUDGET // 6)


# ------------------------------ tiling helpers --------------------------------
def _sublane_pack(dtype):
    """Row granularity that keeps vregs dense (8 f32 / 16 bf16 / 32 int8)."""
    size = jnp.dtype(dtype).itemsize
    if size >= 4:
        return 8
    if size == 2:
        return 16
    return 32


def _round_up(v, m):
    return ((v + m - 1) // m) * m


def _pick_row_tile(rows, elems_per_row, dtype, target_bytes, max_rows=2048):
    """Largest row tile (multiple of sublane pack) within a per-block VMEM budget."""
    pack = _sublane_pack(dtype)
    itemsize = jnp.dtype(dtype).itemsize
    t = max(pack, target_bytes // max(1, elems_per_row * itemsize))
    t = (t // pack) * pack
    t = min(t, max_rows)
    t = min(t, _round_up(rows, pack))  # no point exceeding the row count
    return max(pack, t)


def _pick_tn(n, cap=256):
    # cap is a multiple of 128 -> lane-aligned tiles; n <= cap keeps the full dim.
    return n if n <= cap else cap


def _pick_tk(k, cap=1024):
    if k <= cap:
        return k                          # full-K block is always legal
    for cand in range(cap, 127, -128):    # 128-aligned divisor of K
        if k % cand == 0:
            return cand
    return k                              # fall back to full K


def _pick_tm_dual(m, k1, k2, tn, x_dtype, w_dtype, out_dtype, budget_bytes,
                  *, max_rows=512, extra_per_row_bytes=0):
    """Row tile from the REAL double-buffered VMEM footprint of the dual/fused
    projection: x/c input blocks, the two full-K weight blocks, bias, the output
    block and (optionally) single-buffered LN scratch. Returns None if even the
    minimum tile does not fit (caller must fall back)."""
    pack = _sublane_pack(x_dtype)
    xb = jnp.dtype(x_dtype).itemsize
    wb = jnp.dtype(w_dtype).itemsize
    ob = jnp.dtype(out_dtype).itemsize
    fixed = 2 * ((k1 + k2) * tn * wb + tn * wb)            # weights + bias (x2 bufs)
    per_row = 2 * (k1 + k2) * xb + 2 * tn * ob + extra_per_row_bytes
    avail = budget_bytes - fixed
    if avail < per_row * pack:
        return None
    tm = min(max_rows, avail // per_row)
    tm = (tm // pack) * pack
    tm = min(tm, _round_up(m, pack))
    return tm if tm >= pack else None


# ------------------------------ LayerNorm kernels ------------------------------
def _ln_rows(x, g, b, eps):
    """Row-wise LayerNorm in f32. Two-pass variance ((x-mean)^2): numerically
    robust (no catastrophic cancellation), one extra VALU pass on a mem-bound op."""
    xf = x.astype(jnp.float32)
    mean = jnp.mean(xf, axis=-1, keepdims=True)
    cent = xf - mean
    var = jnp.mean(cent * cent, axis=-1, keepdims=True)
    inv = jax.lax.rsqrt(var + eps)                 # EUP slot, effectively free
    return cent * inv * g.astype(jnp.float32) + b.astype(jnp.float32)


def _layernorm_kernel(x_ref, g_ref, b_ref, o_ref, *, eps):
    o_ref[...] = _ln_rows(x_ref[...], g_ref[...], b_ref[...], eps).astype(o_ref.dtype)


def _layernorm_folded_kernel(x_ref, g_ref, b_ref, o_ref, *, eps, r, d):
    """LayerNorm for feature dims d < 128: r = 128//d logical rows are folded into
    the lane axis (block width r*d == 128 -> unmasked, lane-dense loads/stores).
    Per-segment stats are computed with tiny one-hot matmuls so everything stays
    lane-local (no layout-changing reshapes in the kernel)."""
    xf = x_ref[...].astype(jnp.float32)                               # (tm, r*d)
    p_seg = jax.lax.broadcasted_iota(jnp.int32, (r * d, r), 0) // d
    s_idx = jax.lax.broadcasted_iota(jnp.int32, (r * d, r), 1)
    S = (p_seg == s_idx).astype(jnp.float32)                          # (r*d, r)
    s_idx_t = jax.lax.broadcasted_iota(jnp.int32, (r, r * d), 0)
    p_seg_t = jax.lax.broadcasted_iota(jnp.int32, (r, r * d), 1) // d
    ST = (s_idx_t == p_seg_t).astype(jnp.float32)                     # (r, r*d)

    inv_d = jnp.float32(1.0 / d)
    mean = jnp.dot(xf, S, preferred_element_type=jnp.float32) * inv_d          # (tm, r)
    cent = xf - jnp.dot(mean, ST, preferred_element_type=jnp.float32)          # (tm, r*d)
    var = jnp.dot(cent * cent, S, preferred_element_type=jnp.float32) * inv_d
    inv = jax.lax.rsqrt(var + eps)
    inv_b = jnp.dot(inv, ST, preferred_element_type=jnp.float32)
    out = cent * inv_b * g_ref[...].astype(jnp.float32) + b_ref[...].astype(jnp.float32)
    o_ref[...] = out.astype(o_ref.dtype)


def layernorm_pallas(x, gamma, beta, *, eps=_LN_EPS):
    """LayerNorm over the last axis of x (any leading shape)."""
    orig_shape = x.shape
    d = orig_shape[-1]
    x2 = x.reshape(-1, d)
    rows = x2.shape[0]

    r = 128 // d if (d < 128 and 128 % d == 0) else 1
    if r > 1 and rows % r == 0:
        # Lane-dense fold: (rows, d) -> (rows/r, r*d). Avoids masked vst on d < 128.
        rows_f, d_f = rows // r, r * d
        x2f = x2.reshape(rows_f, d_f)
        gf = jnp.tile(gamma.reshape(-1), r).reshape(1, d_f)
        bf = jnp.tile(beta.reshape(-1), r).reshape(1, d_f)
        row_tile = _pick_row_tile(rows_f, d_f, x.dtype, _LN_TILE_BYTES)
        out = pl.pallas_call(
            functools.partial(_layernorm_folded_kernel, eps=eps, r=r, d=d),
            out_shape=jax.ShapeDtypeStruct((rows_f, d_f), x.dtype),
            grid_spec=pltpu.PrefetchScalarGridSpec(
                num_scalar_prefetch=0,
                grid=(pl.cdiv(rows_f, row_tile),),      # partial tail block masked
                in_specs=[
                    pl.BlockSpec((row_tile, d_f), lambda i: (i, 0)),
                    pl.BlockSpec((1, d_f), lambda i: (0, 0)),
                    pl.BlockSpec((1, d_f), lambda i: (0, 0)),
                ],
                out_specs=pl.BlockSpec((row_tile, d_f), lambda i: (i, 0)),
            ),
            compiler_params=pltpu.CompilerParams(
                dimension_semantics=("parallel",),
                vmem_limit_bytes=_VMEM_LIMIT),
        )(x2f, gf, bf)
        return out.reshape(orig_shape)

    row_tile = _pick_row_tile(rows, d, x.dtype, _LN_TILE_BYTES)
    out = pl.pallas_call(
        functools.partial(_layernorm_kernel, eps=eps),
        out_shape=jax.ShapeDtypeStruct((rows, d), x.dtype),
        grid_spec=pltpu.PrefetchScalarGridSpec(
            num_scalar_prefetch=0,
            grid=(pl.cdiv(rows, row_tile),),            # partial tail block masked
            in_specs=[
                pl.BlockSpec((row_tile, d), lambda i: (i, 0)),
                pl.BlockSpec((1, d), lambda i: (0, 0)),
                pl.BlockSpec((1, d), lambda i: (0, 0)),
            ],
            out_specs=pl.BlockSpec((row_tile, d), lambda i: (i, 0)),
        ),
        compiler_params=pltpu.CompilerParams(
            dimension_semantics=("parallel",),
            vmem_limit_bytes=_VMEM_LIMIT),
    )(x2, gamma.reshape(1, d), beta.reshape(1, d))
    return out.reshape(orig_shape)


# ---------------------------- tiled linear (matmul) ----------------------------
def _matmul_kernel(x_ref, w_ref, b_ref, o_ref, acc_ref):
    @pl.when(pl.program_id(2) == 0)
    def _():
        acc_ref[...] = jnp.zeros_like(acc_ref)

    acc_ref[...] += jnp.dot(x_ref[...], w_ref[...],
                            preferred_element_type=jnp.float32)

    @pl.when(pl.program_id(2) == pl.num_programs(2) - 1)
    def _():
        o_ref[...] = (acc_ref[...] + b_ref[...].astype(jnp.float32)).astype(o_ref.dtype)


def linear_pallas(x, w, b, *, tm=None, tn=None, tk=None):
    """y = x @ w + b with a (M, N, K) grid + f32 VMEM accumulator."""
    orig_shape = x.shape
    k = orig_shape[-1]
    n = w.shape[1]
    x2 = x.reshape(-1, k)
    m = x2.shape[0]

    pack = _sublane_pack(x.dtype)
    if tm is None:
        # 512-row tiles halve weight re-streaming + grid-step count vs 256 (v5e/v6e
        # HBM-bound weight stream; feeds the 256-wide MXU with full-height tiles).
        tm = min(512, _round_up(m, pack))
    if tn is None:
        tn = _pick_tn(n)
    if tk is None:
        tk = _pick_tk(k)
    if k % tk != 0:
        raise ValueError(f"tk={tk} must divide K={k} (no masked K-tail support)")

    out = pl.pallas_call(
        _matmul_kernel,
        out_shape=jax.ShapeDtypeStruct((m, n), x.dtype),
        grid_spec=pltpu.PrefetchScalarGridSpec(
            num_scalar_prefetch=0,
            grid=(pl.cdiv(m, tm), pl.cdiv(n, tn), k // tk),
            in_specs=[
                pl.BlockSpec((tm, tk), lambda i, j, kk: (i, kk)),
                pl.BlockSpec((tk, tn), lambda i, j, kk: (kk, j)),
                pl.BlockSpec((1, tn), lambda i, j, kk: (0, j)),
            ],
            out_specs=pl.BlockSpec((tm, tn), lambda i, j, kk: (i, j)),
            scratch_shapes=[pltpu.VMEM((tm, tn), jnp.float32)],
        ),
        compiler_params=pltpu.CompilerParams(
            dimension_semantics=("parallel", "parallel", "arbitrary"),
            vmem_limit_bytes=_VMEM_LIMIT),
    )(x2, w, b.reshape(1, n))
    return out.reshape(orig_shape[:-1] + (n,))


# --------------------- dual projection: x@W1 + context@W2 + b ------------------
def _dual_linear_kernel(x_ref, c_ref, w1_ref, w2_ref, b_ref, o_ref):
    acc = jnp.dot(x_ref[...], w1_ref[...], preferred_element_type=jnp.float32)
    acc += jnp.dot(c_ref[...], w2_ref[...], preferred_element_type=jnp.float32)
    o_ref[...] = (acc + b_ref[...].astype(jnp.float32)).astype(o_ref.dtype)


def dual_linear_pallas(x, w1, context, w2, b):
    """y = x @ w1 + context @ w2 + b in one pallas_call."""
    lead = x.shape[:-1]
    assert context.shape[:-1] == lead, "x and context leading shapes must match"
    k1, k2, n = x.shape[-1], context.shape[-1], w1.shape[1]
    x2 = x.reshape(-1, k1)
    c2 = context.reshape(-1, k2)
    m = x2.shape[0]

    tn = _pick_tn(n)
    tm = _pick_tm_dual(m, k1, k2, tn, x.dtype, w1.dtype, x.dtype, _VMEM_BUDGET)
    if tm is None:
        # Full-K rows don't fit the VMEM budget: fall back to two K-tiled matmuls.
        return linear_pallas(x, w1, b) + linear_pallas(context, w2, jnp.zeros_like(b))

    out = pl.pallas_call(
        _dual_linear_kernel,
        out_shape=jax.ShapeDtypeStruct((m, n), x.dtype),
        grid_spec=pltpu.PrefetchScalarGridSpec(
            num_scalar_prefetch=0,
            grid=(pl.cdiv(m, tm), pl.cdiv(n, tn)),
            in_specs=[
                pl.BlockSpec((tm, k1), lambda i, j: (i, 0)),
                pl.BlockSpec((tm, k2), lambda i, j: (i, 0)),
                pl.BlockSpec((k1, tn), lambda i, j: (0, j)),
                pl.BlockSpec((k2, tn), lambda i, j: (0, j)),
                pl.BlockSpec((1, tn), lambda i, j: (0, j)),
            ],
            out_specs=pl.BlockSpec((tm, tn), lambda i, j: (i, j)),
        ),
        compiler_params=pltpu.CompilerParams(
            dimension_semantics=("parallel", "parallel"),
            vmem_limit_bytes=_VMEM_LIMIT),
    )(x2, c2, w1, w2, b.reshape(1, n))
    return out.reshape(lead + (n,))


# -------- fully fused: LayerNorm(x)@W1 + LayerNorm(ctx)@W2 + b, one pass -------
def _fused_prenorm_dual_linear_kernel(x_ref, c_ref, g1_ref, b1_ref, g2_ref, b2_ref,
                                      w1_ref, w2_ref, bias_ref, o_ref,
                                      xn_ref, cn_ref, *, eps):
    # The x/c blocks stay resident while j (innermost N axis) sweeps, so the
    # LayerNorms are computed ONCE per row tile into VMEM scratch and reused for
    # every output column tile. Requires the j axis to be "arbitrary" (not split
    # across megacore TCs) so j == 0 is always executed first for each i.
    @pl.when(pl.program_id(1) == 0)
    def _():
        xn_ref[...] = _ln_rows(x_ref[...], g1_ref[...], b1_ref[...],
                               eps).astype(xn_ref.dtype)
        cn_ref[...] = _ln_rows(c_ref[...], g2_ref[...], b2_ref[...],
                               eps).astype(cn_ref.dtype)

    acc = jnp.dot(xn_ref[...], w1_ref[...], preferred_element_type=jnp.float32)
    acc += jnp.dot(cn_ref[...], w2_ref[...], preferred_element_type=jnp.float32)
    o_ref[...] = (acc + bias_ref[...].astype(jnp.float32)).astype(o_ref.dtype)


def fused_prenorm_cross_linear(x, context, g1, b1, g2, b2, w1, w2, bias,
                               *, eps=_LN_EPS):
    """Single pallas_call for LayerNorm(x)@W1 + LayerNorm(ctx)@W2 + bias.
    Returns None when the full-K working set does not fit the VMEM budget
    (v7x 64 MiB) — caller falls back to standalone LN + K-tiled matmuls."""
    lead = x.shape[:-1]
    assert context.shape[:-1] == lead, "x and context leading shapes must match"
    k1, k2, n = x.shape[-1], context.shape[-1], w1.shape[1]
    x2 = x.reshape(-1, k1)
    c2 = context.reshape(-1, k2)
    m = x2.shape[0]

    w_dtype = w1.dtype
    tn = _pick_tn(n)
    tm = _pick_tm_dual(
        m, k1, k2, tn, x.dtype, w_dtype, x.dtype, _VMEM_BUDGET,
        extra_per_row_bytes=(k1 + k2) * jnp.dtype(w_dtype).itemsize)  # LN scratch
    if tm is None:
        return None

    out = pl.pallas_call(
        functools.partial(_fused_prenorm_dual_linear_kernel, eps=eps),
        out_shape=jax.ShapeDtypeStruct((m, n), x.dtype),
        grid_spec=pltpu.PrefetchScalarGridSpec(
            num_scalar_prefetch=0,
            grid=(pl.cdiv(m, tm), pl.cdiv(n, tn)),
            in_specs=[
                pl.BlockSpec((tm, k1), lambda i, j: (i, 0)),
                pl.BlockSpec((tm, k2), lambda i, j: (i, 0)),
                pl.BlockSpec((1, k1), lambda i, j: (0, 0)),
                pl.BlockSpec((1, k1), lambda i, j: (0, 0)),
                pl.BlockSpec((1, k2), lambda i, j: (0, 0)),
                pl.BlockSpec((1, k2), lambda i, j: (0, 0)),
                pl.BlockSpec((k1, tn), lambda i, j: (0, j)),
                pl.BlockSpec((k2, tn), lambda i, j: (0, j)),
                pl.BlockSpec((1, tn), lambda i, j: (0, j)),
            ],
            out_specs=pl.BlockSpec((tm, tn), lambda i, j: (i, j)),
            scratch_shapes=[pltpu.VMEM((tm, k1), w_dtype),
                            pltpu.VMEM((tm, k2), w_dtype)],
        ),
        compiler_params=pltpu.CompilerParams(
            # j must be "arbitrary": LN scratch is written at j == 0 and reused.
            dimension_semantics=("parallel", "arbitrary"),
            vmem_limit_bytes=_VMEM_LIMIT),
    )(x2, c2, g1.reshape(1, k1), b1.reshape(1, k1),
      g2.reshape(1, k2), b2.reshape(1, k2), w1, w2, bias.reshape(1, n))
    return out.reshape(lead + (n,))


# ----------------------------------- PreNorm -----------------------------------
class CrossLinearPallas:
    """Injected fn: fn(x, context) = x @ W1 + context @ W2 + b (single kernel)."""

    def __init__(self, w1, w2, b):
        self.w1, self.w2, self.b = w1, w2, b

    def __call__(self, x, context=None):
        return dual_linear_pallas(x, self.w1, context, self.w2, self.b)


class PreNormPallas:
    """JAX/Pallas equivalent of the PyTorch PreNorm module."""

    def __init__(self, dim, fn, context_dim=None, dtype=jnp.float32):
        self.fn = fn
        # nn.LayerNorm default init: weight=1, bias=0 (learnable)
        self.g = jnp.ones((dim,), dtype)
        self.b = jnp.zeros((dim,), dtype)
        self.has_ctx = context_dim is not None
        if self.has_ctx:
            self.gc = jnp.ones((context_dim,), dtype)
            self.bc = jnp.zeros((context_dim,), dtype)

    def __call__(self, x, **kwargs):
        # Fast path: LayerNorms fused into the projection kernel (no HBM round
        # trip for the normalized tensors) when fn is the known cross-linear and
        # the fused full-K working set fits VMEM; otherwise fall through.
        if (self.has_ctx and isinstance(self.fn, CrossLinearPallas)
                and set(kwargs) == {"context"}):
            out = fused_prenorm_cross_linear(
                x, kwargs["context"], self.g, self.b, self.gc, self.bc,
                self.fn.w1, self.fn.w2, self.fn.b)
            if out is not None:
                return out

        # Generic path: mirrors the PyTorch module for arbitrary injected fn.
        xn = layernorm_pallas(x, self.g, self.b)
        if self.has_ctx:
            normed_context = layernorm_pallas(kwargs["context"], self.gc, self.bc)
            kwargs = dict(kwargs, context=normed_context)
        return self.fn(xn, **kwargs)


# ------------------------------------- demo -------------------------------------
if __name__ == "__main__":
    # Small shapes consistent with the forward: x (B, S, dim), context (B, S, ctx_dim).
    # dim=128 keeps the main path lane-dense; ctx_dim=64 exercises the lane-folded LN.
    B, S, DIM, CTX_DIM = 2, 8, 128, 64
    key = jax.random.PRNGKey(0)
    kx, kc, kw1, kw2, kb, kg1, kb1, kg2, kb2 = jax.random.split(key, 9)

    x = jax.random.normal(kx, (B, S, DIM), jnp.float32)
    context = jax.random.normal(kc, (B, S, CTX_DIM), jnp.float32)

    W1 = jax.random.normal(kw1, (DIM, DIM), jnp.float32) * 0.02
    W2 = jax.random.normal(kw2, (CTX_DIM, DIM), jnp.float32) * 0.02
    bias = jax.random.normal(kb, (DIM,), jnp.float32) * 0.02

    # "learned" LayerNorm params (exercise the affine path, not just identity)
    gx = 1.0 + 0.1 * jax.random.normal(kg1, (DIM,), jnp.float32)
    bx = 0.1 * jax.random.normal(kb1, (DIM,), jnp.float32)
    gc = 1.0 + 0.1 * jax.random.normal(kg2, (CTX_DIM,), jnp.float32)
    bc = 0.1 * jax.random.normal(kb2, (CTX_DIM,), jnp.float32)

    cross_fn = CrossLinearPallas(W1, W2, bias)

    # 1) fused fast path (LN computed once per row tile inside the matmul kernel)
    prenorm_fused = PreNormPallas(DIM, cross_fn, context_dim=CTX_DIM)
    prenorm_fused.g, prenorm_fused.b = gx, bx
    prenorm_fused.gc, prenorm_fused.bc = gc, bc
    out_fused = prenorm_fused(x, context=context)

    # 2) generic path (standalone LN kernels incl. lane-folded ctx LN + injected fn)
    generic_fn = lambda v, context=None: cross_fn(v, context=context)
    prenorm_generic = PreNormPallas(DIM, generic_fn, context_dim=CTX_DIM)
    prenorm_generic.g, prenorm_generic.b = gx, bx
    prenorm_generic.gc, prenorm_generic.bc = gc, bc
    out_generic = prenorm_generic(x, context=context)

    # 3) no-context PreNorm with the tiled single-matmul kernel
    plain_fn = lambda v: linear_pallas(v, W1, bias)
    prenorm_plain = PreNormPallas(DIM, plain_fn)
    prenorm_plain.g, prenorm_plain.b = gx, bx
    out_plain = prenorm_plain(x)

    jax.block_until_ready((out_fused, out_generic, out_plain))

    # ------------------------- pure-JAX references -------------------------
    def ref_ln(v, g, b, eps=_LN_EPS):
        m = v.mean(-1, keepdims=True)
        va = ((v - m) ** 2).mean(-1, keepdims=True)
        return (v - m) / jnp.sqrt(va + eps) * g + b

    def ref_dot(a, w):
        return jnp.dot(a, w, precision=jax.lax.Precision.HIGHEST)

    xn_ref = ref_ln(x, gx, bx)
    cn_ref = ref_ln(context, gc, bc)
    ref_cross = ref_dot(xn_ref, W1) + ref_dot(cn_ref, W2) + bias
    ref_plain = ref_dot(xn_ref, W1) + bias

    assert jnp.allclose(out_fused, ref_cross, atol=1e-3, rtol=1e-3), \
        "fused path mismatch vs reference"
    assert jnp.allclose(out_generic, ref_cross, atol=1e-3, rtol=1e-3), \
        "generic path mismatch vs reference"
    assert jnp.allclose(out_plain, ref_plain, atol=1e-3, rtol=1e-3), \
        "no-context path mismatch vs reference"

    print("KERNEL_OK")
</pallas_src>

<mosaic_0001>
module attributes {stable_mosaic.version = 11 : i64} {
  func.func @_fused_prenorm_dual_linear_kernel(%arg0: i32, %arg1: i32, %arg2: memref<16x128xf32, #tpu.memory_space<vmem>>, %arg3: memref<16x64xf32, #tpu.memory_space<vmem>>, %arg4: memref<1x128xf32, #tpu.memory_space<vmem>>, %arg5: memref<1x128xf32, #tpu.memory_space<vmem>>, %arg6: memref<1x64xf32, #tpu.memory_space<vmem>>, %arg7: memref<1x64xf32, #tpu.memory_space<vmem>>, %arg8: memref<128x128xf32, #tpu.memory_space<vmem>>, %arg9: memref<64x128xf32, #tpu.memory_space<vmem>>, %arg10: memref<1x128xf32, #tpu.memory_space<vmem>>, %arg11: memref<16x128xf32, #tpu.memory_space<vmem>>, %arg12: memref<16x128xf32, #tpu.memory_space<vmem>>, %arg13: memref<16x64xf32, #tpu.memory_space<vmem>>) attributes {dimension_semantics = [#tpu.dimension_semantics<parallel>, #tpu.dimension_semantics<arbitrary>], iteration_bounds = array<i64: 1, 1>, scalar_prefetch = 0 : i64, scratch_operands = 2 : i64, tpu.core_type = #tpu.core_type<tc>, window_params = [{transform_indices = @transform_0, window_bounds = array<i64: 16, 128>}, {transform_indices = @transform_1, window_bounds = array<i64: 16, 64>}, {pipeline_mode = #tpu.pipeline_mode<synchronous>, transform_indices = @transform_2, window_bounds = array<i64: 1, 128>}, {pipeline_mode = #tpu.pipeline_mode<synchronous>, transform_indices = @transform_3, window_bounds = array<i64: 1, 128>}, {pipeline_mode = #tpu.pipeline_mode<synchronous>, transform_indices = @transform_4, window_bounds = array<i64: 1, 64>}, {pipeline_mode = #tpu.pipeline_mode<synchronous>, transform_indices = @transform_5, window_bounds = array<i64: 1, 64>}, {transform_indices = @transform_6, window_bounds = array<i64: 128, 128>}, {transform_indices = @transform_7, window_bounds = array<i64: 64, 128>}, {transform_indices = @transform_8, window_bounds = array<i64: 1, 128>}, {transform_indices = @transform_9, window_bounds = array<i64: 16, 128>}]} {
    %c0_i32 = arith.constant 0 : i32
    %0 = arith.cmpi eq, %arg1, %c0_i32 : i32
    %1 = arith.extui %0 : i1 to i32
    %c0_i32_0 = arith.constant 0 : i32
    %2 = arith.cmpi ne, %1, %c0_i32_0 : i32
    scf.if %2 {
      %c0_13 = arith.constant 0 : index
      %c0_14 = arith.constant 0 : index
      %14 = vector.load %arg2[%c0_13, %c0_14] : memref<16x128xf32, #tpu.memory_space<vmem>>, vector<16x128xf32>
      %c0_15 = arith.constant 0 : index
      %c0_16 = arith.constant 0 : index
      %15 = vector.load %arg4[%c0_15, %c0_16] : memref<1x128xf32, #tpu.memory_space<vmem>>, vector<1x128xf32>
      %c0_17 = arith.constant 0 : index
      %c0_18 = arith.constant 0 : index
      %16 = vector.load %arg5[%c0_17, %c0_18] : memref<1x128xf32, #tpu.memory_space<vmem>>, vector<1x128xf32>
      %cst_19 = arith.constant dense<0.000000e+00> : vector<16xf32>
      %17 = vector.multi_reduction <add>, %14, %cst_19 [1] : vector<16x128xf32> to vector<16xf32>
      %18 = vector.shape_cast %17 : vector<16xf32> to vector<16x1xf32>
      %cst_20 = arith.constant 1.280000e+02 : f32
      %19 = vector.broadcast %cst_20 : f32 to vector<16x1xf32>
      %20 = arith.divf %18, %19 : vector<16x1xf32>
      %21 = vector.broadcast %20 : vector<16x1xf32> to vector<16x128xf32>
      %22 = arith.subf %14, %21 : vector<16x128xf32>
      %23 = arith.mulf %22, %22 : vector<16x128xf32>
      %cst_21 = arith.constant dense<0.000000e+00> : vector<16xf32>
      %24 = vector.multi_reduction <add>, %23, %cst_21 [1] : vector<16x128xf32> to vector<16xf32>
      %25 = vector.shape_cast %24 : vector<16xf32> to vector<16x1xf32>
      %cst_22 = arith.constant 1.280000e+02 : f32
      %26 = vector.broadcast %cst_22 : f32 to vector<16x1xf32>
      %27 = arith.divf %25, %26 : vector<16x1xf32>
      %cst_23 = arith.constant 9.99999974E-6 : f32
      %28 = vector.broadcast %cst_23 : f32 to vector<16x1xf32>
      %29 = arith.addf %27, %28 : vector<16x1xf32>
      %30 = math.rsqrt %29 : vector<16x1xf32>
      %31 = vector.broadcast %30 : vector<16x1xf32> to vector<16x128xf32>
      %32 = arith.mulf %22, %31 : vector<16x128xf32>
      %33 = vector.broadcast %15 : vector<1x128xf32> to vector<16x128xf32>
      %34 = arith.mulf %32, %33 : vector<16x128xf32>
      %35 = vector.broadcast %16 : vector<1x128xf32> to vector<16x128xf32>
      %36 = arith.addf %34, %35 : vector<16x128xf32>
      %c0_24 = arith.constant 0 : index
      %c0_25 = arith.constant 0 : index
      %37 = vector.load %arg12[%c0_24, %c0_25] : memref<16x128xf32, #tpu.memory_space<vmem>>, vector<16x128xf32>
      tpu.vector_store %arg12[%c0_24, %c0_25], %36 {strides = array<i32>} : memref<16x128xf32, #tpu.memory_space<vmem>>, vector<16x128xf32>,
      %c0_26 = arith.constant 0 : index
      %c0_27 = arith.constant 0 : index
      %38 = vector.load %arg3[%c0_26, %c0_27] : memref<16x64xf32, #tpu.memory_space<vmem>>, vector<16x64xf32>
      %c0_28 = arith.constant 0 : index
      %c0_29 = arith.constant 0 : index
      %39 = vector.load %arg6[%c0_28, %c0_29] : memref<1x64xf32, #tpu.memory_space<vmem>>, vector<1x64xf32>
      %c0_30 = arith.constant 0 : index
      %c0_31 = arith.constant 0 : index
      %40 = vector.load %arg7[%c0_30, %c0_31] : memref<1x64xf32, #tpu.memory_space<vmem>>, vector<1x64xf32>
      %cst_32 = arith.constant dense<0.000000e+00> : vector<16xf32>
      %41 = vector.multi_reduction <add>, %38, %cst_32 [1] : vector<16x64xf32> to vector<16xf32>
      %42 = vector.shape_cast %41 : vector<16xf32> to vector<16x1xf32>
      %cst_33 = arith.constant 6.400000e+01 : f32
      %43 = vector.broadcast %cst_33 : f32 to vector<16x1xf32>
      %44 = arith.divf %42, %43 : vector<16x1xf32>
      %45 = vector.broadcast %44 : vector<16x1xf32> to vector<16x64xf32>
      %46 = arith.subf %38, %45 : vector<16x64xf32>
      %47 = arith.mulf %46, %46 : vector<16x64xf32>
      %cst_34 = arith.constant dense<0.000000e+00> : vector<16xf32>
      %48 = vector.multi_reduction <add>, %47, %cst_34 [1] : vector<16x64xf32> to vector<16xf32>
      %49 = vector.shape_cast %48 : vector<16xf32> to vector<16x1xf32>
      %cst_35 = arith.constant 6.400000e+01 : f32
      %50 = vector.broadcast %cst_35 : f32 to vector<16x1xf32>
      %51 = arith.divf %49, %50 : vector<16x1xf32>
      %cst_36 = arith.constant 9.99999974E-6 : f32
      %52 = vector.broadcast %cst_36 : f32 to vector<16x1xf32>
      %53 = arith.addf %51, %52 : vector<16x1xf32>
      %54 = math.rsqrt %53 : vector<16x1xf32>
      %55 = vector.broadcast %54 : vector<16x1xf32> to vector<16x64xf32>
      %56 = arith.mulf %46, %55 : vector<16x64xf32>
      %57 = vector.broadcast %39 : vector<1x64xf32> to vector<16x64xf32>
      %58 = arith.mulf %56, %57 : vector<16x64xf32>
      %59 = vector.broadcast %40 : vector<1x64xf32> to vector<16x64xf32>
      %60 = arith.addf %58, %59 : vector<16x64xf32>
      %c0_37 = arith.constant 0 : index
      %c0_38 = arith.constant 0 : index
      %61 = vector.load %arg13[%c0_37, %c0_38] : memref<16x64xf32, #tpu.memory_space<vmem>>, vector<16x64xf32>
      tpu.vector_store %arg13[%c0_37, %c0_38], %60 {strides = array<i32>} : memref<16x64xf32, #tpu.memory_space<vmem>>, vector<16x64xf32>,
    } else {
    }
    %c0 = arith.constant 0 : index
    %c0_1 = arith.constant 0 : index
    %3 = vector.load %arg12[%c0, %c0_1] : memref<16x128xf32, #tpu.memory_space<vmem>>, vector<16x128xf32>
    %c0_2 = arith.constant 0 : index
    %c0_3 = arith.constant 0 : index
    %4 = vector.load %arg8[%c0_2, %c0_3] : memref<128x128xf32, #tpu.memory_space<vmem>>, vector<128x128xf32>
    %cst = arith.constant dense<0.000000e+00> : vector<16x128xf32>
    %5 = tpu.matmul %3, %4, %cst {dimension_numbers = #tpu.dot_dimension_numbers<[1], [0], [0], [1], [0, 0, 1, 1], [], []>} : vector<16x128xf32>, vector<128x128xf32>, vector<16x128xf32> -> vector<16x128xf32>
    %c0_4 = arith.constant 0 : index
    %c0_5 = arith.constant 0 : index
    %6 = vector.load %arg13[%c0_4, %c0_5] : memref<16x64xf32, #tpu.memory_space<vmem>>, vector<16x64xf32>
    %c0_6 = arith.constant 0 : index
    %c0_7 = arith.constant 0 : index
    %7 = vector.load %arg9[%c0_6, %c0_7] : memref<64x128xf32, #tpu.memory_space<vmem>>, vector<64x128xf32>
    %cst_8 = arith.constant dense<0.000000e+00> : vector<16x128xf32>
    %8 = tpu.matmul %6, %7, %cst_8 {dimension_numbers = #tpu.dot_dimension_numbers<[1], [0], [0], [1], [0, 0, 1, 1], [], []>} : vector<16x64xf32>, vector<64x128xf32>, vector<16x128xf32> -> vector<16x128xf32>
    %9 = arith.addf %5, %8 : vector<16x128xf32>
    %c0_9 = arith.constant 0 : index
    %c0_10 = arith.constant 0 : index
    %10 = vector.load %arg10[%c0_9, %c0_10] : memref<1x128xf32, #tpu.memory_space<vmem>>, vector<1x128xf32>
    %11 = vector.broadcast %10 : vector<1x128xf32> to vector<16x128xf32>
    %12 = arith.addf %9, %11 : vector<16x128xf32>
    %c0_11 = arith.constant 0 : index
    %c0_12 = arith.constant 0 : index
    %13 = vector.load %arg11[%c0_11, %c0_12] : memref<16x128xf32, #tpu.memory_space<vmem>>, vector<16x128xf32>
    tpu.vector_store %arg11[%c0_11, %c0_12], %12 {strides = array<i32>} : memref<16x128xf32, #tpu.memory_space<vmem>>, vector<16x128xf32>,
    return
  }
  func.func @transform_0(%arg0: i32, %arg1: i32) -> (i32, i32) {
    %c0_i32 = arith.constant 0 : i32
    %c0_i32_0 = arith.constant 0 : i32
    return %arg0, %c0_i32 : i32, i32
  }
  func.func @transform_1(%arg0: i32, %arg1: i32) -> (i32, i32) {
    %c0_i32 = arith.constant 0 : i32
    %c0_i32_0 = arith.constant 0 : i32
    return %arg0, %c0_i32 : i32, i32
  }
  func.func @transform_2(%arg0: i32, %arg1: i32) -> (i32, i32) {
    %c0_i32 = arith.constant 0 : i32
    %c0_i32_0 = arith.constant 0 : i32
    %c0_i32_1 = arith.constant 0 : i32
    return %c0_i32, %c0_i32_0 : i32, i32
  }
  func.func @transform_3(%arg0: i32, %arg1: i32) -> (i32, i32) {
    %c0_i32 = arith.constant 0 : i32
    %c0_i32_0 = arith.constant 0 : i32
    %c0_i32_1 = arith.constant 0 : i32
    return %c0_i32, %c0_i32_0 : i32, i32
  }
  func.func @transform_4(%arg0: i32, %arg1: i32) -> (i32, i32) {
    %c0_i32 = arith.constant 0 : i32
    %c0_i32_0 = arith.constant 0 : i32
    %c0_i32_1 = arith.constant 0 : i32
    return %c0_i32, %c0_i32_0 : i32, i32
  }
  func.func @transform_5(%arg0: i32, %arg1: i32) -> (i32, i32) {
    %c0_i32 = arith.constant 0 : i32
    %c0_i32_0 = arith.constant 0 : i32
    %c0_i32_1 = arith.constant 0 : i32
    return %c0_i32, %c0_i32_0 : i32, i32
  }
  func.func @transform_6(%arg0: i32, %arg1: i32) -> (i32, i32) {
    %c0_i32 = arith.constant 0 : i32
    %c0_i32_0 = arith.constant 0 : i32
    return %c0_i32, %arg1 : i32, i32
  }
  func.func @transform_7(%arg0: i32, %arg1: i32) -> (i32, i32) {
    %c0_i32 = arith.constant 0 : i32
    %c0_i32_0 = arith.constant 0 : i32
    return %c0_i32, %arg1 : i32, i32
  }
  func.func @transform_8(%arg0: i32, %arg1: i32) -> (i32, i32) {
    %c0_i32 = arith.constant 0 : i32
    %c0_i32_0 = arith.constant 0 : i32
    return %c0_i32, %arg1 : i32, i32
  }
  func.func @transform_9(%arg0: i32, %arg1: i32) -> (i32, i32) {
    %c0_i32 = arith.constant 0 : i32
    return %arg0, %arg1 : i32, i32
  }
}

</mosaic_0001>

<bundles_post_ra>
// kernel: tpu_custom_call.1
= control target key start
LH: loop header
LB: loop body
LE: loop exit
PB: predicated region body
PF: predicated region fallthrough
CT: control target
= control target key end

     0   :  { %14 = vsyncpa [#allocation5], 0  ;;  %s863_s0 = inlined_call_operand.hbm [shape: f32[16,128], index: 0, kind: input, shape index: {}]   ;;  %s864_s1 = inlined_call_operand.hbm [shape: f32[16,64], index: 1, kind: input, shape index: {}]   ;;  %s865_s2 = inlined_call_operand.vmem [shape: f32[1,128], index: 2, kind: input, shape index: {}]   ;;  %s866_s3 = inlined_call_operand.vmem [shape: f32[1,128], index: 3, kind: input, shape index: {}]   ;;  %s867_s4 = inlined_call_operand.vmem [shape: f32[1,64], index: 4, kind: input, shape index: {}]   ;;  %s868_s5 = inlined_call_operand.vmem [shape: f32[1,64], index: 5, kind: input, shape index: {}]   ;;  %s869_s6 = inlined_call_operand.hbm [shape: f32[128,128], index: 6, kind: input, shape index: {}]   ;;  %s870_s7 = inlined_call_operand.hbm [shape: f32[64,128], index: 7, kind: input, shape index: {}]   ;;  %s871_s8 = inlined_call_operand.vmem [shape: f32[1,128], index: 8, kind: input, shape index: {}]   ;;  %s872_s9 = inlined_call_operand.hbm [shape: f32[16,128], index: 9, kind: output, shape index: {}]  }
   0x1   :  { %15 = vsyncpa [#allocation8], 0 }
   0x2   :  { %16 = vsyncpa [#allocation11], 0 }
   0x3   :  { %17 = vsyncpa [#allocation6], 0  ;;  %s674_s30 = smov [#allocation7]   ;;  %s675_s11 = smov [#allocation4]  }
   0x4   :  { %s35_s10 = sshll.u32 %s674_s30, 4  ;;  %s23_s12 = sshll.u32 %s675_s11, 4  ;;  %s36_s10 = int_to_ptr.vmem [resolvable:$true] %s35_s10  ;;  %s731_s12 = int_to_ptr.vmem [resolvable:$true] %s23_s12 }
   0x5   :  { %s556_s15 = scalar_lea.hbm %s864_s1, 256 }
   0x6   :  { %p557_p0 = scmp.ne.s32.totalorder %s864_s1, %s556_s15  ;;  %p560_p1 = scmp.lt.u32.totalorder %s556_s15, %s864_s1 }
   0x8   :  { %p562_p2 = pnand %p560_p1, %p557_p0 }
   0xa   :  { %565 = shalt.err (!%p562_p2)
}
   0xb   :  { %s566_s20 = scalar_lea.vmem %s36_s10, 256  ;;  %p571_p4 = scmp.lt.s32.totalorder %s36_s10, %s36_s10 }
   0xc   :  { %p567_p3 = scmp.ne.s32.totalorder %s36_s10, %s566_s20  ;;  %p572_p5 = scmp.lt.s32.totalorder %s566_s20, %s566_s20 }
   0xe   :  { %p573_p6 = por %p572_p5, %p571_p4 }
  0x10   :  { %p574_p7 = pnand %p573_p6, %p567_p3 }
  0x12   :  { %577 = shalt.err (!%p574_p7)
}
  0x13   :  { %s676_s21 = smov 128   ;;  %s677_s22 = smov 8  }
  0x14   :  { %41 = dma.hbm_to_vmem [thread:$0]  %s864_s1, 256, %s36_s10, [#allocation8], %s676_s21, %s676_s21, %s677_s22  }
  0x15   :  { %s578_s27 = scalar_lea.hbm %s863_s0, 256 }
  0x16   :  { %p579_p8 = scmp.ne.s32.totalorder %s863_s0, %s578_s27  ;;  %p582_p9 = scmp.lt.u32.totalorder %s578_s27, %s863_s0 }
  0x18   :  { %p584_p10 = pnand %p582_p9, %p579_p8 }
  0x1a   :  { %587 = shalt.err (!%p584_p10)
}
  0x1b   :  { %s588_s13 = scalar_lea.vmem %s731_s12, 256  ;;  %p593_p12 = scmp.lt.s32.totalorder %s731_s12, %s731_s12 }
  0x1c   :  { %p589_p11 = scmp.ne.s32.totalorder %s731_s12, %s588_s13  ;;  %p594_p13 = scmp.lt.s32.totalorder %s588_s13, %s588_s13 }
  0x1e   :  { %p595_p0 = por %p594_p13, %p593_p12 }
  0x20   :  { %p596_p1 = pnand %p595_p0, %p589_p11 }
  0x22   :  { %599 = shalt.err (!%p596_p1)
}
  0x23   :  { %29 = dma.hbm_to_vmem [thread:$0]  %s863_s0, 256, %s731_s12, [#allocation5], %s676_s21, %s676_s21, %s677_s22  }
  0x24   :  { %s678_s14 = smov [#allocation9]   ;;  %s679_s16 = smov [#allocation10]  }
  0x25   :  { %s55_s15 = sshll.u32 %s678_s14, 4  ;;  %s67_s17 = sshll.u32 %s679_s16, 4  ;;  %s56_s15 = int_to_ptr.vmem [resolvable:$true] %s55_s15  ;;  %s768_s17 = int_to_ptr.vmem [resolvable:$true] %s67_s17 }
  0x26   :  { %s600_s20 = scalar_lea.hbm %s869_s6, 2048 }
  0x27   :  { %p601_p2 = scmp.ne.s32.totalorder %s869_s6, %s600_s20  ;;  %p604_p3 = scmp.lt.u32.totalorder %s600_s20, %s869_s6 }
  0x29   :  { %p606_p4 = pnand %p604_p3, %p601_p2 }
  0x2b   :  { %609 = shalt.err (!%p606_p4)
}
  0x2c   :  { %s610_s0 = scalar_lea.vmem %s56_s15, 2048  ;;  %p615_p6 = scmp.lt.s32.totalorder %s56_s15, %s56_s15 }
  0x2d   :  { %p611_p5 = scmp.ne.s32.totalorder %s56_s15, %s610_s0  ;;  %p616_p7 = scmp.lt.s32.totalorder %s610_s0, %s610_s0 }
  0x2f   :  { %p617_p8 = por %p616_p7, %p615_p6 }
  0x31   :  { %p618_p9 = pnand %p617_p8, %p611_p5 }
  0x33   :  { %621 = shalt.err (!%p618_p9)
}
  0x34   :  { %61 = dma.hbm_to_vmem [thread:$0]  %s869_s6, 2048, %s56_s15, [#allocation8], %s676_s21, %s676_s21, %s677_s22  }
  0x35   :  { %s622_s30 = scalar_lea.hbm %s870_s7, 1024 }
  0x36   :  { %p623_p10 = scmp.ne.s32.totalorder %s870_s7, %s622_s30  ;;  %p626_p11 = scmp.lt.u32.totalorder %s622_s30, %s870_s7 }
  0x38   :  { %p628_p12 = pnand %p626_p11, %p623_p10 }
  0x3a   :  { %631 = shalt.err (!%p628_p12)
}
  0x3b   :  { %s632_s14 = scalar_lea.vmem %s768_s17, 1024  ;;  %p637_p0 = scmp.lt.s32.totalorder %s768_s17, %s768_s17 }
  0x3c   :  { %p633_p13 = scmp.ne.s32.totalorder %s768_s17, %s632_s14  ;;  %p638_p1 = scmp.lt.s32.totalorder %s632_s14, %s632_s14 }
  0x3e   :  { %p639_p2 = por %p638_p1, %p637_p0 }
  0x40   :  { %p640_p3 = pnand %p639_p2, %p633_p13 }
  0x42   :  { %643 = shalt.err (!%p640_p3)
}
  0x43   :  { %73 = dma.hbm_to_vmem [thread:$0]  %s870_s7, 1024, %s768_s17, [#allocation11], %s676_s21, %s676_s21, %s677_s22  }
  0x44   :  { %666 = dma.done.wait [#allocation5], 256  }
  0x45   :  { %667 = vsyncadd [#allocation5], 4294967040 }
  0x46   :  { %668 = dma.done.wait [#allocation8], 2304  }
  0x47   :  { %669 = vsyncadd [#allocation8], 4294964992 }
  0x48   :  { %670 = dma.done.wait [#allocation11], 1024  }
  0x49   :  { %671 = vsyncadd [#allocation11], 4294966272  ;;  %vm141_vm0 = vcmask 523264   ;;  %v137_v0 = vld [vmem:[#allocation7] sm:$0xff]  ;;  %v138_v1 = vld [vmem:[#allocation7 + $0x8] sm:$0xff] }
  0x4a   :  { %v92_v2 = vld [vmem:[#allocation4] sm:$0xff]  ;;  %v142_v3 = vsel %vm141_vm0, %v137_v0, 0.0  ;;  %v93_v4 = vld [vmem:[#allocation4 + $0x8] sm:$0xff]  ;;  %v145_v5 = vsel %vm141_vm0, %v138_v1, 0.0  ;;  %v191_v27 = vld [vmem:[#allocation9 + $0x10] sm:$0xff] }
  0x4b   :  { %96 = vadd.xlane.f32.xlu1 %v92_v2  ;;  %143 = vadd.xlane.f32.xlu0 %v142_v3  ;;  %v189_v6 = vld [vmem:[#allocation9] sm:$0xff]  ;;  %v190_v7 = vld [vmem:[#allocation9 + $0x8] sm:$0xff]  ;;  %v192_v28 = vld [vmem:[#allocation9 + $0x18] sm:$0xff] }
  0x4c   :  { %v507_v8 = vpack.c.bf16 %v190_v7, %v189_v6  ;;  %v511_v29 = vpack.c.bf16 %v192_v28, %v191_v27  ;;  %v193_v30 = vld [vmem:[#allocation9 + $0x20] sm:$0xff]  ;;  %v194_v31 = vld [vmem:[#allocation9 + $0x28] sm:$0xff]  ;;  %v195_v33 = vld [vmem:[#allocation9 + $0x30] sm:$0xff] }
  0x4d   :  { %v515_v32 = vpack.c.bf16 %v194_v31, %v193_v30  ;;  %v196_v34 = vld [vmem:[#allocation9 + $0x38] sm:$0xff]  ;;  %v197_v36 = vld [vmem:[#allocation9 + $0x40] sm:$0xff]  ;;  %v198_v37 = vld [vmem:[#allocation9 + $0x48] sm:$0xff] }
  0x4e   :  { %508 = vmatprep.subr.bf16.mxu0 %v507_v8  ;;  %v519_v35 = vpack.c.bf16 %v196_v34, %v195_v33  ;;  %v523_v38 = vpack.c.bf16 %v198_v37, %v197_v36  ;;  %v207_v39 = vld [vmem:[#allocation10] sm:$0xff]  ;;  %v208_v40 = vld [vmem:[#allocation10 + $0x8] sm:$0xff]  ;;  %v199_v41 = vld [vmem:[#allocation9 + $0x50] sm:$0xff] }
  0x4f   :  { %98 = vadd.xlane.f32.xlu1 %v93_v4  ;;  %146 = vadd.xlane.f32.xlu0 %v145_v5  ;;  %v491_v42 = vpack.c.bf16 %v208_v40, %v207_v39  ;;  %v200_v43 = vld [vmem:[#allocation9 + $0x58] sm:$0xff]  ;;  %v209_v45 = vld [vmem:[#allocation10 + $0x10] sm:$0xff]  ;;  %v201_v47 = vld [vmem:[#allocation9 + $0x60] sm:$0xff] }
  0x50   :  { %510 = vmatpush3.bf16.msra.mxu0 %v507_v8  ;;  %v527_v44 = vpack.c.bf16 %v200_v43, %v199_v41  ;;  %v210_v46 = vld [vmem:[#allocation10 + $0x18] sm:$0xff]  ;;  %v202_v49 = vld [vmem:[#allocation9 + $0x68] sm:$0xff]  ;;  %v211_v51 = vld [vmem:[#allocation10 + $0x20] sm:$0xff] }
  0x51   :  { %512 = vmatprep.subr.bf16.mxu0 %v511_v29  ;;  %492 = vmatprep.subr.bf16.mxu1 %v491_v42  ;;  %v495_v48 = vpack.c.bf16 %v210_v46, %v209_v45  ;;  %v531_v50 = vpack.c.bf16 %v202_v49, %v201_v47  ;;  %v212_v52 = vld [vmem:[#allocation10 + $0x28] sm:$0xff]  ;;  %v203_v53 = vld [vmem:[#allocation9 + $0x70] sm:$0xff]  ;;  %v204_v55 = vld [vmem:[#allocation9 + $0x78] sm:$0xff] }
  0x52   :  { %494 = vmatpush3.bf16.msra.mxu1 %v491_v42  ;;  %v499_v54 = vpack.c.bf16 %v212_v52, %v211_v51  ;;  %v535_v56 = vpack.c.bf16 %v204_v55, %v203_v53  ;;  %v213_v57 = vld [vmem:[#allocation10 + $0x30] sm:$0xff]  ;;  %v214_v58 = vld [vmem:[#allocation10 + $0x38] sm:$0xff] }
  0x53   :  { %496 = vmatprep.subr.bf16.mxu1 %v495_v48  ;;  %v503_v59 = vpack.c.bf16 %v214_v58, %v213_v57 }
  0x54   :  { %514 = vmatpush3.bf16.msra.mxu0 %v511_v29 }
  0x55   :  { %516 = vmatprep.subr.bf16.mxu0 %v515_v32 }
  0x56   :  { %498 = vmatpush3.bf16.msra.mxu1 %v495_v48 }
  0x57   :  { %500 = vmatprep.subr.bf16.mxu1 %v499_v54 }
  0x58   :  { %518 = vmatpush3.bf16.msra.mxu0 %v515_v32 }
  0x59   :  { %520 = vmatprep.subr.bf16.mxu0 %v519_v35 }
  0x5a   :  { %502 = vmatpush3.bf16.msra.mxu1 %v499_v54 }
  0x5b   :  { %504 = vmatprep.subr.bf16.mxu1 %v503_v59 }
  0x5c   :  { %522 = vmatpush3.bf16.msra.mxu0 %v519_v35 }
  0x5d   :  { %524 = vmatprep.subr.bf16.mxu0 %v523_v38 }
  0x5e   :  { %506 = vmatpush3.bf16.msra.mxu1 %v503_v59 }
  0x60   :  { %526 = vmatpush3.bf16.msra.mxu0 %v523_v38 }
  0x61   :  { %528 = vmatprep.subr.bf16.mxu0 %v527_v44 }
  0x64   :  { %530 = vmatpush3.bf16.msra.mxu0 %v527_v44 }
  0x65   :  { %532 = vmatprep.subr.bf16.mxu0 %v531_v50 }
  0x68   :  { %534 = vmatpush3.bf16.msra.mxu0 %v531_v50 }
  0x69   :  { %536 = vmatprep.subr.bf16.mxu0 %v535_v56 }
  0x6c   :  { %538 = vmatpush3.bf16.msra.mxu0 %v535_v56 }
  0xd8   :  { %v97_v9 = vpop.xlane.xlu1 %96  ;;  %v144_v10 = vpop.xlane.xlu0 %143 }
  0xd9   :  { %v101_v11 = vmul.f32 0.0078125, %v97_v9  ;;  %v149_v12 = vmul.f32 0.015625, %v144_v10  ;;  %v404_v9 = vld [vmem:[%s867_s4] ss:$0 sm:$0xff] }
  0xdb   :  { %v807_v13 = vsub.f32 %v137_v0, %v149_v12  ;;  %v809_v16 = vsub.f32 %v92_v2, %v101_v11  ;;  %v405_v11 = vld [vmem:[%s868_s5] ss:$0 sm:$0xff]  ;;  %s680_s5 = smov [#allocation12]  }
  0xdc   :  { %v99_v14 = vpop.xlane.xlu1 %98  ;;  %v147_v15 = vpop.xlane.xlu0 %146  ;;  %s388_s24 = sshll.u32 %s680_s5, 4  ;;  %s389_s24 = int_to_ptr.vmem [resolvable:$true] %s388_s24 }
  0xdd   :  { %v102_v17 = vmul.f32 0.0078125, %v99_v14  ;;  %v150_v18 = vmul.f32 0.015625, %v147_v15  ;;  %v153_v19 = vmul.f32 %v807_v13, %v807_v13  ;;  %v105_v23 = vmul.f32 %v809_v16, %v809_v16  ;;  %v402_v15 = vld [vmem:[%s865_s2] ss:$0 sm:$0xff]  ;;  %s644_s25 = scalar_lea.vmem %s389_s24, 256  ;;  %p649_p5 = scmp.lt.s32.totalorder %s389_s24, %s389_s24 }
  0xde   :  { %p645_p4 = scmp.ne.s32.totalorder %s389_s24, %s644_s25  ;;  %p650_p6 = scmp.lt.s32.totalorder %s644_s25, %s644_s25 }
  0xdf   :  { %v813_v20 = vsub.f32 %v138_v1, %v150_v18  ;;  %v155_v21 = vsel %vm141_vm0, %v153_v19, 0.0  ;;  %v816_v22 = vsub.f32 %v93_v4, %v102_v17 }
  0xe0   :  { %156 = vadd.xlane.f32.xlu0 %v155_v21  ;;  %p651_p7 = por %p650_p6, %p649_p5 }
  0xe1   :  { %v154_v24 = vmul.f32 %v813_v20, %v813_v20  ;;  %v106_v26 = vmul.f32 %v816_v22, %v816_v22 }
  0xe2   :  { %p652_p8 = pnand %p651_p7, %p645_p4 }
  0xe3   :  { %v158_v25 = vsel %vm141_vm0, %v154_v24, 0.0 }
  0xe4   :  { %159 = vadd.xlane.f32.xlu1 %v158_v25  ;;  %107 = vadd.xlane.f32.xlu0 %v105_v23 }
  0xe8   :  { %109 = vadd.xlane.f32.xlu1 %v106_v26 }
 0x16d   :  { %v157_v60 = vpop.xlane.xlu0 %156 }
 0x16e   :  { %v161_v61 = vmul.f32 0.015625, %v157_v60 }
 0x170   :  { %v163_v62 = vadd.f32 1e-05, %v161_v61 }
 0x171   :  { %v108_v63 = vpop.xlane.xlu0 %107  ;;  %v160_v0 = vpop.xlane.xlu1 %159 }
 0x172   :  { %548 = vrsqrt.f32 %v163_v62  ;;  %v111_v1 = vmul.f32 0.0078125, %v108_v63  ;;  %v162_v2 = vmul.f32 0.015625, %v160_v0 }
 0x174   :  { %v113_v3 = vadd.f32 1e-05, %v111_v1  ;;  %v164_v4 = vadd.f32 1e-05, %v162_v2 }
 0x175   :  { %v110_v5 = vpop.xlane.xlu1 %109 }
 0x176   :  { %550 = vrsqrt.f32 %v113_v3  ;;  %v112_v6 = vmul.f32 0.0078125, %v110_v5 }
 0x177   :  { %552 = vrsqrt.f32 %v164_v4 }
 0x178   :  { %v114_v7 = vadd.f32 1e-05, %v112_v6 }
 0x17a   :  { %554 = vrsqrt.f32 %v114_v7 }
 0x17c   :  { %v549_v8 = vpop.eup %548 }
 0x17d   :  { %v167_v10 = vmul.f32 %v549_v8, %v807_v13  ;;  %v403_v13 = vld [vmem:[%s866_s3] ss:$0 sm:$0xff] }
 0x17f   :  { %v175_v12 = vmul.f32 %v404_v9, %v167_v10 }
 0x180   :  { %v551_v14 = vpop.eup %550 }
 0x181   :  { %v553_v17 = vpop.eup %552  ;;  %v183_v18 = vadd.f32 %v405_v11, %v175_v12  ;;  %v117_v19 = vmul.f32 %v551_v14, %v809_v16 }
 0x182   :  { %v168_v21 = vmul.f32 %v553_v17, %v813_v20 }
 0x183   :  { %185 = vst.msk [vmem:[#allocation3] sm:$0xff] %vm141_vm0, %v183_v18  ;;  %v125_v23 = vmul.f32 %v402_v15, %v117_v19 }
 0x184   :  { %v555_v24 = vpop.eup %554  ;;  %v176_v25 = vmul.f32 %v404_v9, %v168_v21 }
 0x185   :  { %v118_v26 = vmul.f32 %v555_v24, %v816_v22  ;;  %v133_v27 = vadd.f32 %v403_v13, %v125_v23  ;;  %v408_v22 = vld [vmem:[%s871_s8] ss:$0 sm:$0xff] }
 0x186   :  { %v184_v28 = vadd.f32 %v405_v11, %v176_v25 }
 0x187   :  { %v126_v29 = vmul.f32 %v402_v15, %v118_v26  ;;  %488 = vmatprep.mubr.f32.mxu0 %v133_v27 }
 0x188   :  { %186 = vst.msk [vmem:[#allocation3 + $0x8] sm:$0xff] %vm141_vm0, %v184_v28 }
 0x189   :  { %v134_v16 = vadd.f32 %v403_v13, %v126_v29 }
 0x18a   :  { %v205_v30 = vld [vmem:[#allocation3] sm:$0xff] }
 0x18b   :  { %453 = vmatprep.mubr.msk.f32.mxu1 %vm141_vm0, %v205_v30  ;;  %489 = vmatmul.mubr.f32.vlgmr.msra.gmra.mrb[0].mxu0 %v134_v16 }
 0x18f   :  { %v206_v20 = vld [vmem:[#allocation3 + $0x8] sm:$0xff] }
 0x190   :  { %454 = vmatmul.mubr.msk.f32.vlgmr.msra.gmra.mrb[0].mxu1 %vm141_vm0, %v206_v20 }
 0x25e   :  { %v490_v31 = vpop.f32.mrb[0].mxu0 }
 0x25f   :  { %v363_v32 = vpop.f32.mrb[1].mxu0 }
 0x263   :  { %v455_v33 = vpop.f32.mrb[0].mxu1 }
 0x264   :  { %v369_v34 = vadd.f32 %v490_v31, %v455_v33  ;;  %v288_v35 = vpop.f32.mrb[1].mxu1 }
 0x265   :  { %v364_v36 = vadd.f32 %v363_v32, %v288_v35 }
 0x266   :  { %v380_v37 = vadd.f32 %v408_v22, %v369_v34 }
 0x267   :  { %v379_v38 = vadd.f32 %v408_v22, %v364_v36 }
 0x268   :  { %382 = vst [vmem:[#allocation12 + $0x8] sm:$0xff] %v380_v37 }
 0x269   :  { %381 = vst [vmem:[#allocation12] sm:$0xff] %v379_v38 }
 0x26a   :  { %655 = shalt.err (!%p652_p8)
}
 0x26b   :  { %s656_s8 = scalar_lea.hbm %s872_s9, 256 }
 0x26c   :  { %p657_p9 = scmp.ne.s32.totalorder %s872_s9, %s656_s8  ;;  %p660_p10 = scmp.lt.u32.totalorder %s656_s8, %s872_s9 }
 0x26e   :  { %p662_p11 = pnand %p660_p10, %p657_p9 }
 0x270   :  { %665 = shalt.err (!%p662_p11)
}
 0x271   :  { %394 = dma.vmem_to_hbm [thread:$0]  %s389_s24, 256, %s872_s9, [#allocation6], %s676_s21, %s676_s21, %s677_s22  }
 0x272   :  { %672 = dma.done.wait [#allocation6], 256  }
 0x273   :  { %673 = vsyncadd [#allocation6], 4294967040 }
 0x274   :  { %398 = vsyncpa [#allocation5], 1 }
 0x275   :  { %399 = vsyncpa [#allocation8], 1 }
 0x276   :  { %400 = vsyncpa [#allocation11], 1 }
 0x277   :  { %401 = vsyncpa [#allocation6], 1 }

</bundles_post_ra>
